<compile_context>
chip_gen: v7x
topology: tpu7x:2x2x1
jax: 0.10.0
libtpu: 0.0.40
codegen_flags: <defaults>
</compile_context>

<pallas_src>
import functools

import jax
import jax.numpy as jnp
from jax.experimental import pallas as pl
from jax.experimental.pallas import tpu as pltpu


def _bert_layernorm_kernel(x_ref, gamma_ref, beta_ref, o_ref, *, eps, inv_n):
    # x_ref block: (TB, S_eff, H_eff); each batch row normalized over its own
    # (S_eff, H_eff) elements. gamma/beta block: (1, H_eff).
    #
    # Single-pass stats with f32 accumulation (no explicit f32 copy of the
    # whole block). Two-stage reduction: seq/sublane-ish axis first, then the
    # cross-lane reduce only sees (TB, H_eff).
    row_sum = jnp.sum(x_ref[...], axis=1, dtype=jnp.float32)              # (TB, H)
    row_sq = jnp.sum(jnp.square(x_ref[...].astype(jnp.float32)), axis=1)  # (TB, H)
    ssum = jnp.sum(row_sum, axis=-1, keepdims=True)                       # (TB, 1)
    ssq = jnp.sum(row_sq, axis=-1, keepdims=True)                         # (TB, 1)

    u = ssum * inv_n                                                      # mean
    # Clamp: E[x^2] - u^2 can go slightly negative from cancellation.
    var = jnp.maximum(ssq * inv_n - u * u, 0.0)
    inv = jax.lax.rsqrt(var + eps)                                        # (TB, 1)

    u3 = u[:, :, None]                                                    # (TB,1,1)
    inv3 = inv[:, :, None]                                                # (TB,1,1)
    gamma3 = gamma_ref[...].astype(jnp.float32)[None]                     # (1,1,H)
    beta3 = beta_ref[...].astype(jnp.float32)[None]                       # (1,1,H)

    # Well-conditioned normalize + affine, streamed straight into the store.
    o_ref[...] = (
        (x_ref[...].astype(jnp.float32) - u3) * inv3 * gamma3 + beta3
    ).astype(o_ref.dtype)


def _vmem_cap_bytes():
    # Physical VMEM per TensorCore minus headroom for compiler scratch/sems.
    try:
        cap = int(pltpu.get_tpu_info().vmem_capacity_bytes)
    except Exception:
        cap = 64 << 20  # conservative default (v7x per-TC)
    return max(cap - (16 << 20), 16 << 20)


def _pick_tb(B, per_sample_bytes, target_block_bytes):
    # Block ~target_block_bytes, but keep >= ~8 grid steps when B allows so
    # the DMA pipeline stays full and both v7x TCs see work.
    tb_cap = max(1, int(target_block_bytes // max(1, per_sample_bytes)))
    tb_cap = min(tb_cap, max(1, B // 8))
    tb_cap = min(tb_cap, B)
    divisors = [d for d in range(1, tb_cap + 1) if B % d == 0]
    # Prefer an even grid count (v7x megacore splits the grid across 2 TCs).
    even = [d for d in divisors if (B // d) % 2 == 0]
    pool = even if even else divisors
    return max(pool)


def bert_layer_norm(x, gamma, beta, eps=1e-12, target_block_bytes=2 * 1024 * 1024):
    B, S, H = x.shape
    itemsize = jnp.dtype(x.dtype).itemsize

    # Lane-dense layout: if H is not a multiple of 128, flatten (S, H) into a
    # single lane axis so output stores are unmasked full-lane vst.
    lane_dense = (H % 128 == 0)
    if lane_dense:
        s_eff, h_eff = S, H
        x3 = x
        gamma2 = gamma.reshape(1, H)
        beta2 = beta.reshape(1, H)
    else:
        s_eff, h_eff = 1, S * H
        x3 = x.reshape(B, 1, S * H)
        gamma2 = jnp.tile(gamma, S).reshape(1, S * H)
        beta2 = jnp.tile(beta, S).reshape(1, S * H)

    per_sample_bytes = s_eff * h_eff * itemsize
    tb = _pick_tb(B, per_sample_bytes, target_block_bytes)

    cap = _vmem_cap_bytes()

    def vmem_est(t):
        blk_elems = t * s_eff * h_eff
        # double-buffered in + out blocks, streamed f32 working set, slack
        return 4 * blk_elems * itemsize + 2 * blk_elems * 4 + (4 << 20)

    # Shrink TB (not just the limit) if the estimate exceeds the VMEM cap.
    while tb > 1 and vmem_est(tb) > cap:
        tb = max(d for d in range(1, tb) if B % d == 0)
    # TODO(synk): if a single sample still exceeds the cap (very long S on a
    # 64 MiB-VMEM part), split S with a two-phase stats-accumulate /
    # normalize structure instead of a full-sample block.

    grid_b = B // tb
    vmem_limit = int(min(cap, max(vmem_est(tb), 32 << 20)))

    kernel = functools.partial(
        _bert_layernorm_kernel, eps=float(eps), inv_n=1.0 / float(S * H)
    )

    out = pl.pallas_call(
        kernel,
        out_shape=jax.ShapeDtypeStruct((B, s_eff, h_eff), x.dtype),
        grid=(grid_b,),
        in_specs=[
            pl.BlockSpec((tb, s_eff, h_eff), lambda b: (b, 0, 0)),
            pl.BlockSpec((1, h_eff), lambda b: (0, 0)),
            pl.BlockSpec((1, h_eff), lambda b: (0, 0)),
        ],
        out_specs=pl.BlockSpec((tb, s_eff, h_eff), lambda b: (b, 0, 0)),
        compiler_params=pltpu.CompilerParams(
            dimension_semantics=("parallel",),
            vmem_limit_bytes=vmem_limit,
        ),
    )(x3, gamma2, beta2)

    return out.reshape(B, S, H)


def bert_layer_norm_ref(x, gamma, beta, eps=1e-12):
    u = jnp.mean(x, axis=(1, 2), keepdims=True)
    s = jnp.mean((x - u) ** 2, axis=(1, 2), keepdims=True)
    xn = (x - u) / jnp.sqrt(s + eps)
    return gamma * xn + beta


if __name__ == "__main__":
    B, S, H = 2, 8, 32
    key = jax.random.PRNGKey(0)
    x = jax.random.normal(key, (B, S, H), dtype=jnp.float32)

    # Deterministic parameter init per nn.Module.__init__: gamma=ones, beta=zeros.
    gamma = jnp.ones((H,), dtype=jnp.float32)
    beta = jnp.zeros((H,), dtype=jnp.float32)

    out = bert_layer_norm(x, gamma, beta)
    out = jax.block_until_ready(out)

    ref = bert_layer_norm_ref(x, gamma, beta)
    assert out.shape == (B, S, H)
    assert jnp.allclose(out, ref, atol=1e-5, rtol=1e-5)

    print("KERNEL_OK")
</pallas_src>

<mosaic_0001>
module attributes {stable_mosaic.version = 11 : i64} {
  func.func @_bert_layernorm_kernel(%arg0: i32, %arg1: memref<1x1x256xf32, #tpu.memory_space<vmem>>, %arg2: memref<1x256xf32, #tpu.memory_space<vmem>>, %arg3: memref<1x256xf32, #tpu.memory_space<vmem>>, %arg4: memref<1x1x256xf32, #tpu.memory_space<vmem>>) attributes {dimension_semantics = [#tpu.dimension_semantics<parallel>], iteration_bounds = array<i64: 2>, scalar_prefetch = 0 : i64, scratch_operands = 0 : i64, tpu.core_type = #tpu.core_type<tc>, window_params = [{transform_indices = @transform_0, window_bounds = array<i64: 1, 1, 256>}, {pipeline_mode = #tpu.pipeline_mode<synchronous>, transform_indices = @transform_1, window_bounds = array<i64: 1, 256>}, {pipeline_mode = #tpu.pipeline_mode<synchronous>, transform_indices = @transform_2, window_bounds = array<i64: 1, 256>}, {transform_indices = @transform_3, window_bounds = array<i64: 1, 1, 256>}]} {
    %c0 = arith.constant 0 : index
    %c0_0 = arith.constant 0 : index
    %c0_1 = arith.constant 0 : index
    %0 = vector.load %arg1[%c0, %c0_0, %c0_1] : memref<1x1x256xf32, #tpu.memory_space<vmem>>, vector<1x1x256xf32>
    %cst = arith.constant dense<0.000000e+00> : vector<1x256xf32>
    %1 = vector.multi_reduction <add>, %0, %cst [1] : vector<1x1x256xf32> to vector<1x256xf32>
    %c0_2 = arith.constant 0 : index
    %c0_3 = arith.constant 0 : index
    %c0_4 = arith.constant 0 : index
    %2 = vector.load %arg1[%c0_2, %c0_3, %c0_4] : memref<1x1x256xf32, #tpu.memory_space<vmem>>, vector<1x1x256xf32>
    %3 = arith.mulf %2, %2 : vector<1x1x256xf32>
    %cst_5 = arith.constant dense<0.000000e+00> : vector<1x256xf32>
    %4 = vector.multi_reduction <add>, %3, %cst_5 [1] : vector<1x1x256xf32> to vector<1x256xf32>
    %cst_6 = arith.constant dense<0.000000e+00> : vector<1xf32>
    %5 = vector.multi_reduction <add>, %1, %cst_6 [1] : vector<1x256xf32> to vector<1xf32>
    %6 = vector.shape_cast %5 : vector<1xf32> to vector<1x1xf32>
    %cst_7 = arith.constant dense<0.000000e+00> : vector<1xf32>
    %7 = vector.multi_reduction <add>, %4, %cst_7 [1] : vector<1x256xf32> to vector<1xf32>
    %8 = vector.shape_cast %7 : vector<1xf32> to vector<1x1xf32>
    %cst_8 = arith.constant 3.906250e-03 : f32
    %9 = vector.broadcast %cst_8 : f32 to vector<1x1xf32>
    %10 = arith.mulf %6, %9 : vector<1x1xf32>
    %cst_9 = arith.constant 3.906250e-03 : f32
    %11 = vector.broadcast %cst_9 : f32 to vector<1x1xf32>
    %12 = arith.mulf %8, %11 : vector<1x1xf32>
    %13 = arith.mulf %10, %10 : vector<1x1xf32>
    %14 = arith.subf %12, %13 : vector<1x1xf32>
    %cst_10 = arith.constant 0.000000e+00 : f32
    %15 = vector.broadcast %cst_10 : f32 to vector<1x1xf32>
    %16 = arith.maximumf %14, %15 : vector<1x1xf32>
    %cst_11 = arith.constant 9.99999996E-13 : f32
    %17 = vector.broadcast %cst_11 : f32 to vector<1x1xf32>
    %18 = arith.addf %16, %17 : vector<1x1xf32>
    %19 = math.rsqrt %18 : vector<1x1xf32>
    %20 = vector.shape_cast %10 : vector<1x1xf32> to vector<1x1x1xf32>
    %21 = vector.shape_cast %19 : vector<1x1xf32> to vector<1x1x1xf32>
    %c0_12 = arith.constant 0 : index
    %c0_13 = arith.constant 0 : index
    %22 = vector.load %arg2[%c0_12, %c0_13] : memref<1x256xf32, #tpu.memory_space<vmem>>, vector<1x256xf32>
    %23 = vector.shape_cast %22 : vector<1x256xf32> to vector<1x1x256xf32>
    %c0_14 = arith.constant 0 : index
    %c0_15 = arith.constant 0 : index
    %24 = vector.load %arg3[%c0_14, %c0_15] : memref<1x256xf32, #tpu.memory_space<vmem>>, vector<1x256xf32>
    %25 = vector.shape_cast %24 : vector<1x256xf32> to vector<1x1x256xf32>
    %c0_16 = arith.constant 0 : index
    %c0_17 = arith.constant 0 : index
    %c0_18 = arith.constant 0 : index
    %26 = vector.load %arg1[%c0_16, %c0_17, %c0_18] : memref<1x1x256xf32, #tpu.memory_space<vmem>>, vector<1x1x256xf32>
    %27 = vector.broadcast %20 : vector<1x1x1xf32> to vector<1x1x256xf32>
    %28 = arith.subf %26, %27 : vector<1x1x256xf32>
    %29 = vector.broadcast %21 : vector<1x1x1xf32> to vector<1x1x256xf32>
    %30 = arith.mulf %28, %29 : vector<1x1x256xf32>
    %31 = arith.mulf %30, %23 : vector<1x1x256xf32>
    %32 = arith.addf %31, %25 : vector<1x1x256xf32>
    %c0_19 = arith.constant 0 : index
    %c0_20 = arith.constant 0 : index
    %c0_21 = arith.constant 0 : index
    %33 = vector.load %arg4[%c0_19, %c0_20, %c0_21] : memref<1x1x256xf32, #tpu.memory_space<vmem>>, vector<1x1x256xf32>
    tpu.vector_store %arg4[%c0_19, %c0_20, %c0_21], %32 {strides = array<i32>} : memref<1x1x256xf32, #tpu.memory_space<vmem>>, vector<1x1x256xf32>,
    return
  }
  func.func @transform_0(%arg0: i32) -> (i32, i32, i32) {
    %c0_i32 = arith.constant 0 : i32
    %c0_i32_0 = arith.constant 0 : i32
    %c0_i32_1 = arith.constant 0 : i32
    return %arg0, %c0_i32, %c0_i32_0 : i32, i32, i32
  }
  func.func @transform_1(%arg0: i32) -> (i32, i32) {
    %c0_i32 = arith.constant 0 : i32
    %c0_i32_0 = arith.constant 0 : i32
    %c0_i32_1 = arith.constant 0 : i32
    return %c0_i32, %c0_i32_0 : i32, i32
  }
  func.func @transform_2(%arg0: i32) -> (i32, i32) {
    %c0_i32 = arith.constant 0 : i32
    %c0_i32_0 = arith.constant 0 : i32
    %c0_i32_1 = arith.constant 0 : i32
    return %c0_i32, %c0_i32_0 : i32, i32
  }
  func.func @transform_3(%arg0: i32) -> (i32, i32, i32) {
    %c0_i32 = arith.constant 0 : i32
    %c0_i32_0 = arith.constant 0 : i32
    %c0_i32_1 = arith.constant 0 : i32
    return %arg0, %c0_i32, %c0_i32_0 : i32, i32, i32
  }
}

</mosaic_0001>

<bundles_post_ra>
// kernel: tpu_custom_call.1
= control target key start
LH: loop header
LB: loop body
LE: loop exit
PB: predicated region body
PF: predicated region fallthrough
CT: control target
= control target key end

     0   :  { %8 = vsyncpa [#allocation3], 0  ;;  %s694_s0 = inlined_call_operand.hbm [shape: f32[2,1,256], index: 0, kind: input, shape index: {}]   ;;  %s695_s1 = inlined_call_operand.vmem [shape: f32[1,256], index: 1, kind: input, shape index: {}]   ;;  %s696_s2 = inlined_call_operand.vmem [shape: f32[1,256], index: 2, kind: input, shape index: {}]   ;;  %s697_s3 = inlined_call_operand.hbm [shape: f32[2,1,256], index: 3, kind: output, shape index: {}]  }
   0x1   :  { %10 = vsyncpa [#allocation3 + $0x1], 0 }
   0x2   :  { %11 = vsyncpa [#allocation4], 0 }
   0x3   :  { %13 = vsyncpa [#allocation4 + $0x1], 0  ;;  %s523_s12 = smov 0   ;;  %s525_s13 = smov 0  }
   0x4   :  { %s527_s14 = smov 0   ;;  %s529_s15 = smov 0  }
   0x5 LB: > { %s544_s16 = sadd.s32 4294967295, %s499_s15   ;;  %s339_s17 = sadd.s32 4294967294, %s499_s15   ;;  %s499_s15 = sphi %s529_s15, %s712_s15   ;;  %s495_s14 = sphi %s527_s14, %s711_s14   ;;  %s491_s13 = sphi %s525_s13, %s710_s13   ;;  %s487_s12 = sphi %s523_s12, %s709_s12  }
   0x6   : > { %s548_s18 = sadd.s32 1, %s499_s15   ;;  %s26_s19 = sadd.s32 1, %s495_s14 }
   0x7   : > { %s23_s20 = ssub.s32 %s499_s15, %s548_s18  ;;  %p33_p0 = scmp.ne.s32.totalorder %s495_s14, %s491_s13 }
   0x8   : > { %p24_p1 = scmp.eq.s32.totalorder %s23_s20, 0  ;;  %p34_p2 = scmp.eq.s32.totalorder %s499_s15, 0 }
   0x9   : > { %p39_p3 = scmp.ne.s32.totalorder %s491_s13, %s487_s12  ;;  %p40_p4 = scmp.eq.s32.totalorder %s544_s16, 0 }
   0xa   : > { %s560_s21 = scalar_select %p24_p1, %s495_s14, %s26_s19  }
   0xb   : > { %p562_p5 = por %p34_p2, %p33_p0  ;;  %p566_p6 = por %p40_p4, %p39_p3 }
   0xc   : > { %p105_p7 = scmp.eq.s32.totalorder %s544_s16, 1  ;;  %p111_p8 = scmp.eq.s32.totalorder %s339_s17, 1 }
   0xd   : > { %p367_p10 = scmp.lt.s32.totalorder %s499_s15, 2  ;;  %s137_s26 = sand.u32 1, %s495_s14  }
   0xe   : > { %p573_p11 = por %p105_p7, %p33_p0  ;;  %p577_p12 = por %p111_p8, %p39_p3 }
   0xf   : > { %s353_s27 = sshll.u32 %s499_s15, 5  ;;  %s342_s28 = sshll.u32 %s137_s26, 1 }
  0x10   : > { %s701_s24 = scalar_select %p573_p11, 1, 0 }
  0x11   : > { %s702_s25 = scalar_select %p577_p12, 1, 0 }
  0x12   : > { %s586_s4 = scalar_lea.hbm %s694_s0, %s353_s27  ;;  %s141_s5 = scalar_lea.vmem [#allocation2], %s342_s28 }
  0x13   : > { %s149_s6 = sshll.u32 %s141_s5, 4  ;;  %p590_p13 = pnand %p367_p10, %p562_p5  ;;  %s594_s6 = int_to_ptr.vmem [resolvable:$true] %s149_s6 }
  0x14   : > { %s138_s8 = scalar_lea.sflag [#allocation3], %s137_s26  ;;  %s403_s9 = scalar_lea.hbm %s586_s4, 32 }
  0x15   : > { %p404_p2 = scmp.ne.s32.totalorder %s586_s4, %s403_s9  ;;  %p405_p3 = pneg %p590_p13 }
  0x16   : > { %s408_s17 = scalar_lea.hbm %s694_s0, 64  ;;  %p409_p5 = scmp.lt.u32.totalorder %s586_s4, %s694_s0 }
  0x17   : > { %p406_p4 = pnand %p405_p3, %p404_p2  ;;  %p410_p8 = scmp.lt.u32.totalorder %s408_s17, %s403_s9 }
  0x18   : > { %p412_p9 = scmp.lt.u32.totalorder %s403_s9, %s586_s4 }
  0x19   : > { %p407_p7 = pneg %p406_p4  ;;  %p411_p10 = por %p410_p8, %p409_p5 }
  0x1b   : > { %p413_p0 = por %p412_p9, %p411_p10 }
  0x1d   : > { %p414_p1 = pnand %p413_p0, %p407_p7 }
  0x1f   : > { %417 = shalt.err (!%p414_p1)
}
  0x20   : > { %s418_s22 = scalar_lea.vmem %s594_s6, 32  ;;  %s501_s26 = smov [#allocation2]  }
  0x21   : > { %p419_p2 = scmp.ne.s32.totalorder %s594_s6, %s418_s22  ;;  %s423_s27 = sshll.u32 %s501_s26, 4  ;;  %s424_s27 = int_to_ptr.vmem [resolvable:$false] %s423_s27 }
  0x22   : > { %s425_s28 = scalar_lea.vmem %s424_s27, 64  ;;  %p426_p11 = scmp.lt.s32.totalorder %s594_s6, %s424_s27 }
  0x23   : > { %p421_p4 = pnand %p419_p2, %p405_p3  ;;  %p427_p5 = scmp.lt.s32.totalorder %s425_s28, %s418_s22 }
  0x25   : > { %p422_p12 = pneg %p421_p4  ;;  %p428_p8 = por %p427_p5, %p426_p11 }
  0x27   : > { %p429_p9 = pnand %p428_p8, %p422_p12 }
  0x29   : > { %432 = shalt.err (!%p429_p9)
}
  0x2a   : > { %362 = dma.hbm_to_vmem [thread:$0]  (!%p590_p13), %s586_s4, 32, %s594_s6, %s138_s8  }
  0x2b   : > { %p704_p0 = scmp.lt.s32.totalorder %s499_s15, 3  ;;  %p705_p1 = scmp.ge.s32.totalorder %s499_s15, 1 }
  0x2d   : > { %p155_p3 = pnand %p705_p1, %p704_p0 }
  0x2e   : > { %s628_s29 = sand.u32 (!%p155_p3), 1, %s491_s13  }
  0x2f   : > { %158 = sbr.rel (%p155_p3) target bundleno = 253 (0xfd), region = 32  ;;  %s346_s30 = sshll.u32 (!%p155_p3), %s628_s29, 1 }
  0x30   : > { %s161_s5 = scalar_lea.sflag (!%p155_p3), [#allocation3], %s628_s29  ;;  %s164_s7 = scalar_lea.vmem (!%p155_p3), [#allocation2], %s346_s30 }
  0x36   : > { %478 = dma.done.wait (%p566_p6), %s161_s5, 32  }
  0x37   : > { %480 = vsyncadd (%p566_p6), %s161_s5, 4294967264  ;;  %v192_v0 = vlaneseq  ;;  %v187_v4 = vld [vmem:[%s164_s7] sm:$0x3]  ;;  %vm202_vm0 = vcmask 1040384   ;;  %s354_s9 = sshll.u32 %s544_s16, 5  ;;  %s186_s10 = scalar_lea.vmem [#allocation5], %s346_s30 }
  0x38   : > { %v189_v7 = vmul.f32 %v187_v4, %v187_v4  ;;  %v231_v28 = vld [vmem:[%s695_s1] sm:$0x3]  ;;  %s269_s11 = sshll.u32 %s186_s10, 4  ;;  %s650_s20 = scalar_lea.hbm %s697_s3, %s354_s9  ;;  %s652_s11 = int_to_ptr.vmem [resolvable:$true] %s269_s11 }
  0x39   : > { %v193_v1 = vshrl.u32 %v192_v0, 7  ;;  %v232_v30 = vld [vmem:[%s696_s2] sm:$0x3]  ;;  %vm251_vm1 = vcmp.lt.s32.totalorder %v192_v0, 256  ;;  %s255_s22 = scalar_lea.sflag [#allocation4], %s628_s29  ;;  %s433_s26 = scalar_lea.vmem %s652_s11, 32 }
  0x3a   : > { %p434_p6 = scmp.ne.s32.totalorder %s652_s11, %s433_s26  ;;  %p706_p11 = scmp.ne.s32.totalorder %s701_s24, 0 }
  0x3b   : > { %v194_v2 = vsub.s32 0, %v193_v1  ;;  %v198_v3 = vsub.s32 1, %v193_v1  ;;  %s502_s16 = smov [#allocation5]  }
  0x3c   : > { %p435_p12 = pnand %p434_p6, %p706_p11  ;;  %s437_s27 = sshll.u32 %s502_s16, 4  ;;  %s438_s27 = int_to_ptr.vmem [resolvable:$false] %s437_s27 }
  0x3d   : > { %v195_v5 = vrot.slane %v187_v4, %v194_v2  ;;  %v199_v6 = vrot.slane %v187_v4, %v198_v3  ;;  %v212_v10 = vrot.slane %v189_v7, %v194_v2  ;;  %v216_v11 = vrot.slane %v189_v7, %v198_v3  ;;  %s439_s28 = scalar_lea.vmem %s438_s27, 64  ;;  %p440_p7 = scmp.lt.s32.totalorder %s652_s11, %s438_s27 }
  0x3e   : > { %p436_p13 = pneg %p435_p12  ;;  %p441_p10 = scmp.lt.s32.totalorder %s439_s28, %s433_s26 }
  0x3f   : > { %v203_v8 = vsel %vm202_vm0, %v195_v5, 0.0  ;;  %v204_v9 = vsel %vm202_vm0, %v199_v6, 0.0  ;;  %v219_v13 = vsel %vm202_vm0, %v212_v10, 0.0  ;;  %v220_v14 = vsel %vm202_vm0, %v216_v11, 0.0 }
  0x40   : > { %v205_v12 = vadd.f32 %v204_v9, %v203_v8  ;;  %v221_v15 = vadd.f32 %v220_v14, %v219_v13  ;;  %p442_p2 = por %p441_p10, %p440_p7 }
  0x42   : > { %206 = vadd.xlane.f32.xlu0 %v205_v12  ;;  %p443_p4 = pnand %p442_p2, %p436_p13 }
  0x46   : > { %222 = vadd.xlane.f32.xlu0 %v221_v15 }
  0xcf   : > { %v207_v16 = vpop.xlane.xlu0 %206 }
  0xd0   : > { %v224_v17 = vmul.f32 0.00390625, %v207_v16 }
  0xd2   : > { %v226_v19 = vmul.f32 %v224_v17, %v224_v17  ;;  %v237_v24 = vrot.slane %v224_v17, %v194_v2 }
  0xd3   : > { %v223_v18 = vpop.xlane.xlu0 %222 }
  0xd4   : > { %v225_v20 = vmul.f32 0.00390625, %v223_v18  ;;  %v239_v26 = vsub.f32 %v187_v4, %v237_v24 }
  0xd6   : > { %v227_v21 = vsub.f32 %v225_v20, %v226_v19 }
  0xd8   : > { %v228_v22 = vmax.f32 %v227_v21, 0.0 }
  0xda   : > { %v229_v23 = vadd.f32 1e-12, %v228_v22 }
  0xdc   : > { %401 = vrsqrt.f32 %v229_v23 }
  0xe6   : > { %v402_v25 = vpop.eup %401 }
  0xe7   : > { %v244_v27 = vrot.slane %v402_v25, %v194_v2 }
  0xe9   : > { %v246_v29 = vmul.f32 %v244_v27, %v239_v26 }
  0xeb   : > { %v247_v31 = vmul.f32 %v246_v29, %v231_v28 }
  0xed   : > { %v248_v32 = vadd.f32 %v247_v31, %v232_v30 }
  0xef   : > { %253 = vst.msk [vmem:[%s186_s10] sm:$0x3] %vm251_vm1, %v248_v32 }
  0xf0   : > { %446 = shalt.err (!%p443_p4)
}
  0xf1   : > { %s447_s29 = scalar_lea.hbm %s650_s20, 32  ;;  %s451_s7 = scalar_lea.hbm %s697_s3, 64 }
  0xf2   : > { %p448_p5 = scmp.ne.s32.totalorder %s650_s20, %s447_s29  ;;  %p452_p0 = scmp.lt.u32.totalorder %s650_s20, %s697_s3 }
  0xf3   : > { %p453_p1 = scmp.lt.u32.totalorder %s451_s7, %s447_s29  ;;  %p455_p6 = scmp.lt.u32.totalorder %s447_s29, %s650_s20 }
  0xf4   : > { %p449_p8 = pnand %p448_p5, %p706_p11 }
  0xf5   : > { %p454_p3 = por %p453_p1, %p452_p0 }
  0xf6   : > { %p450_p9 = pneg %p449_p8 }
  0xf7   : > { %p456_p12 = por %p455_p6, %p454_p3 }
  0xf9   : > { %p457_p13 = pnand %p456_p12, %p450_p9 }
  0xfb   : > { %460 = shalt.err (!%p457_p13)
}
  0xfc   : > { %357 = dma.vmem_to_hbm [thread:$0]  (%p706_p11), %s652_s11, 32, %s650_s20, %s255_s22  }
  0xfd PF: > { %s281_s6 = sand.u32 1, %s487_s12   ;;  %p707_p7 = scmp.ne.s32.totalorder %s702_s25, 0 }
  0xfe   : > { %p708_p10 = scmp.ge.s32.totalorder %s499_s15, 2  ;;  %s282_s8 = scalar_lea.sflag [#allocation4], %s281_s6 }
 0x100   : > { %p364_p2 = pnand %p708_p10, %p707_p7 }
 0x102   : > { %482 = dma.done.wait (!%p364_p2), %s282_s8, 32  }
 0x103   : > { %484 = vsyncadd (!%p364_p2), %s282_s8, 4294967264  ;;  %p16_p4 = scmp.ge.s32.totalorder %s548_s18, 4   ;;  %s709_s12 = smov %s491_s13 }
 0x104   : > { %s710_s13 = smov %s495_s14  ;;  %s711_s14 = smov %s560_s21 }
 0x105   : > { %s712_s15 = smov %s548_s18  ;;  %18 = sbr.rel (!%p16_p4) target bundleno = 5 (0x5), region = 77 }
 0x10c   :  { %287 = vsyncpa [#allocation3], 1 }
 0x10d   :  { %289 = vsyncpa [#allocation3 + $0x1], 1 }
 0x10e   :  { %290 = vsyncpa [#allocation4], 1 }
 0x10f   :  { %292 = vsyncpa [#allocation4 + $0x1], 1 }

</bundles_post_ra>
